<compile_context>
chip_gen: v6e
topology: v6e:2x2x1
jax: 0.10.0
libtpu: 0.0.40
codegen_flags: <defaults>
</compile_context>

<pallas_src>
import functools

import jax
import jax.numpy as jnp
from jax.experimental import pallas as pl
from jax.experimental.pallas import tpu as pltpu

EPS = 1e-5


# ----------------------------------------------------------------------------
# Fused SE kernel: one grid step == one batch sample.
#   x_ref  : (C, HW)   input sample, channels on sublanes, H*W on lanes
#   w1_ref : (C, MID)  squeeze conv weight  (w1[c, m] = torch_conv1.weight[m, c])
#   s1/b1  : (1, MID)  folded BN1 scale / shift
#   w2_ref : (C, MID)  excite conv weight, pre-transposed (w2t[c, m] = W2[m, c])
#   s2/b2  : (C, 1)    folded BN2 scale / shift
#   o_ref  : (C, HW)   x * gate
# ----------------------------------------------------------------------------
def _se_kernel(x_ref, w1_ref, s1_ref, b1_ref, w2_ref, s2_ref, b2_ref, o_ref,
               *, inv_hw):
    x = x_ref[...]                                            # (C, HW) f32

    # --- AdaptiveAvgPool2d(1): mean over the lane (H*W) axis -> (C, 1) ------
    pooled = jnp.sum(x, axis=-1, keepdims=True) * inv_hw      # (C, 1)

    # --- squeeze: 1x1 conv (C -> MID) as VPU broadcast-FMA + sublane reduce -
    h = jnp.sum(pooled * w1_ref[...], axis=0, keepdims=True)  # (1, MID)
    h = jnp.maximum(h * s1_ref[...] + b1_ref[...], 0.0)       # BN1 + ReLU

    # --- excite: 1x1 conv (MID -> C) as VPU broadcast-FMA + lane reduce -----
    g = jnp.sum(h * w2_ref[...], axis=1, keepdims=True)       # (C, 1)
    g = g * s2_ref[...] + b2_ref[...]                         # BN2
    # hsigmoid: relu6(g + 3) / 6
    g = jnp.minimum(jnp.maximum(g + 3.0, 0.0), 6.0) * (1.0 / 6.0)

    # --- gate the input (lane broadcast of per-channel scalar) --------------
    o_ref[...] = (x * g).astype(o_ref.dtype)


# ----------------------------------------------------------------------------
# Wrapper: single pallas_call over the batch, NCHW kept (pure reshape only).
# ----------------------------------------------------------------------------
def _se_forward_impl(x_nchw, fp):
    n, c, h, w = x_nchw.shape
    hw = h * w
    mid = fp["w1"].shape[1]
    x3 = x_nchw.reshape(n, c, hw)                  # view: no data movement

    out3 = pl.pallas_call(
        functools.partial(_se_kernel, inv_hw=1.0 / hw),
        out_shape=jax.ShapeDtypeStruct((n, c, hw), x3.dtype),
        grid=(n,),
        in_specs=[
            pl.BlockSpec((None, c, hw), lambda i: (i, 0, 0)),   # x (batch dim squeezed)
            pl.BlockSpec((c, mid), lambda i: (0, 0)),           # w1
            pl.BlockSpec((1, mid), lambda i: (0, 0)),           # s1
            pl.BlockSpec((1, mid), lambda i: (0, 0)),           # b1
            pl.BlockSpec((c, mid), lambda i: (0, 0)),           # w2 (transposed)
            pl.BlockSpec((c, 1), lambda i: (0, 0)),             # s2
            pl.BlockSpec((c, 1), lambda i: (0, 0)),             # b2
        ],
        out_specs=pl.BlockSpec((None, c, hw), lambda i: (i, 0, 0)),
        compiler_params=pltpu.CompilerParams(
            dimension_semantics=("parallel",)),
    )(x3, fp["w1"], fp["s1"], fp["b1"], fp["w2t"], fp["s2"], fp["b2"])

    return out3.reshape(n, c, h, w)


se_forward = jax.jit(_se_forward_impl)


# ----------------------------------------------------------------------------
# One-time parameter folding (eval-mode BN -> per-channel scale/shift);
# done OUTSIDE the forward so it is not re-computed per call.
# ----------------------------------------------------------------------------
def fold_se_params(p):
    def fold(gamma, beta, mean, var):
        scale = gamma / jnp.sqrt(var + EPS)
        shift = beta - mean * scale
        return scale, shift

    s1, b1 = fold(*p["bn1"])          # (MID,)
    s2, b2 = fold(*p["bn2"])          # (C,)
    return {
        "w1": p["w1"],                # (C, MID)
        "s1": s1.reshape(1, -1),      # (1, MID)
        "b1": b1.reshape(1, -1),      # (1, MID)
        "w2t": p["w2"].T,             # (C, MID)  -- pre-transposed
        "s2": s2.reshape(-1, 1),      # (C, 1)
        "b2": b2.reshape(-1, 1),      # (C, 1)
    }


# ----------------------------------------------------------------------------
# Pure-JAX reference (eval-mode BN with running stats), for verification.
# ----------------------------------------------------------------------------
def ref_se(x_nchw, p):
    def bn(y, gamma, beta, mean, var):
        return (y - mean) / jnp.sqrt(var + EPS) * gamma + beta

    pooled = jnp.mean(x_nchw, axis=(2, 3))                   # (N, C)
    h = jax.nn.relu(bn(pooled @ p["w1"], *p["bn1"]))         # (N, MID)
    g = bn(h @ p["w2"], *p["bn2"])                           # (N, C)
    g = jnp.clip(g + 3.0, 0.0, 6.0) / 6.0                    # hsigmoid
    return x_nchw * g[:, :, None, None]


# ----------------------------------------------------------------------------
def make_params(key, *, in_size, reduction):
    mid = in_size // reduction
    keys = jax.random.split(key, 10)

    def bn_params(k1, k2, k3, k4, c):
        gamma = jax.random.uniform(k1, (c,), jnp.float32, 0.5, 1.5)
        beta = jax.random.normal(k2, (c,), jnp.float32) * 0.1
        mean = jax.random.normal(k3, (c,), jnp.float32) * 0.1
        var = jax.random.uniform(k4, (c,), jnp.float32, 0.5, 1.5)
        return (gamma, beta, mean, var)

    return {
        # w1[c, m] corresponds to torch conv1.weight[m, c, 0, 0]
        "w1": jax.random.normal(keys[0], (in_size, mid), jnp.float32) * 0.3,
        # w2[m, c] corresponds to torch conv2.weight[c, m, 0, 0]
        "w2": jax.random.normal(keys[1], (mid, in_size), jnp.float32) * 0.3,
        "bn1": bn_params(keys[2], keys[3], keys[4], keys[5], mid),
        "bn2": bn_params(keys[6], keys[7], keys[8], keys[9], in_size),
    }


if __name__ == "__main__":
    # SeModule(in_size=16, reduction=4)  ->  hidden channels = 4
    IN, RED = 16, 4
    N, H, W = 2, 16, 16                    # H*W = 256 -> lane-dense blocks

    key = jax.random.PRNGKey(0)
    kx, kp = jax.random.split(key)
    x = jax.random.normal(kx, (N, IN, H, W), jnp.float32)    # NCHW like PyTorch
    raw_params = make_params(kp, in_size=IN, reduction=RED)
    folded = fold_se_params(raw_params)    # hoisted: folded once, reused per call

    out = se_forward(x, folded)
    out = jax.block_until_ready(out)

    ref = ref_se(x, raw_params)
    assert out.shape == (N, IN, H, W), out.shape
    err = float(jnp.max(jnp.abs(out - ref)))
    assert jnp.allclose(out, ref, rtol=1e-4, atol=1e-4), err

    print("KERNEL_OK")
</pallas_src>

<mosaic_0001>
module attributes {stable_mosaic.version = 11 : i64} {
  func.func @_se_kernel(%arg0: i32, %arg1: memref<1x16x256xf32, #tpu.memory_space<vmem>>, %arg2: memref<16x4xf32, #tpu.memory_space<vmem>>, %arg3: memref<1x4xf32, #tpu.memory_space<vmem>>, %arg4: memref<1x4xf32, #tpu.memory_space<vmem>>, %arg5: memref<16x4xf32, #tpu.memory_space<vmem>>, %arg6: memref<16x1xf32, #tpu.memory_space<vmem>>, %arg7: memref<16x1xf32, #tpu.memory_space<vmem>>, %arg8: memref<1x16x256xf32, #tpu.memory_space<vmem>>) attributes {dimension_semantics = [#tpu.dimension_semantics<parallel>], iteration_bounds = array<i64: 2>, scalar_prefetch = 0 : i64, scratch_operands = 0 : i64, tpu.core_type = #tpu.core_type<tc>, window_params = [{transform_indices = @transform_0, window_bounds = array<i64: 1, 16, 256>}, {pipeline_mode = #tpu.pipeline_mode<synchronous>, transform_indices = @transform_1, window_bounds = array<i64: 16, 4>}, {pipeline_mode = #tpu.pipeline_mode<synchronous>, transform_indices = @transform_2, window_bounds = array<i64: 1, 4>}, {pipeline_mode = #tpu.pipeline_mode<synchronous>, transform_indices = @transform_3, window_bounds = array<i64: 1, 4>}, {pipeline_mode = #tpu.pipeline_mode<synchronous>, transform_indices = @transform_4, window_bounds = array<i64: 16, 4>}, {pipeline_mode = #tpu.pipeline_mode<synchronous>, transform_indices = @transform_5, window_bounds = array<i64: 16, 1>}, {pipeline_mode = #tpu.pipeline_mode<synchronous>, transform_indices = @transform_6, window_bounds = array<i64: 16, 1>}, {transform_indices = @transform_7, window_bounds = array<i64: 1, 16, 256>}]} {
    %c0 = arith.constant 0 : index
    %c0_0 = arith.constant 0 : index
    %c0_1 = arith.constant 0 : index
    %0 = vector.load %arg1[%c0, %c0_0, %c0_1] : memref<1x16x256xf32, #tpu.memory_space<vmem>>, vector<1x16x256xf32>
    %1 = vector.shape_cast %0 : vector<1x16x256xf32> to vector<16x256xf32>
    %cst = arith.constant dense<0.000000e+00> : vector<16xf32>
    %2 = vector.multi_reduction <add>, %1, %cst [1] : vector<16x256xf32> to vector<16xf32>
    %3 = vector.shape_cast %2 : vector<16xf32> to vector<16x1xf32>
    %cst_2 = arith.constant 3.906250e-03 : f32
    %4 = vector.broadcast %cst_2 : f32 to vector<16x1xf32>
    %5 = arith.mulf %3, %4 : vector<16x1xf32>
    %c0_3 = arith.constant 0 : index
    %c0_4 = arith.constant 0 : index
    %6 = vector.load %arg2[%c0_3, %c0_4] : memref<16x4xf32, #tpu.memory_space<vmem>>, vector<16x4xf32>
    %7 = vector.broadcast %5 : vector<16x1xf32> to vector<16x4xf32>
    %8 = arith.mulf %7, %6 : vector<16x4xf32>
    %cst_5 = arith.constant dense<0.000000e+00> : vector<4xf32>
    %9 = vector.multi_reduction <add>, %8, %cst_5 [0] : vector<16x4xf32> to vector<4xf32>
    %10 = vector.shape_cast %9 : vector<4xf32> to vector<1x4xf32>
    %c0_6 = arith.constant 0 : index
    %c0_7 = arith.constant 0 : index
    %11 = vector.load %arg3[%c0_6, %c0_7] : memref<1x4xf32, #tpu.memory_space<vmem>>, vector<1x4xf32>
    %12 = arith.mulf %10, %11 : vector<1x4xf32>
    %c0_8 = arith.constant 0 : index
    %c0_9 = arith.constant 0 : index
    %13 = vector.load %arg4[%c0_8, %c0_9] : memref<1x4xf32, #tpu.memory_space<vmem>>, vector<1x4xf32>
    %14 = arith.addf %12, %13 : vector<1x4xf32>
    %cst_10 = arith.constant 0.000000e+00 : f32
    %15 = vector.broadcast %cst_10 : f32 to vector<1x4xf32>
    %16 = arith.maximumf %14, %15 : vector<1x4xf32>
    %c0_11 = arith.constant 0 : index
    %c0_12 = arith.constant 0 : index
    %17 = vector.load %arg5[%c0_11, %c0_12] : memref<16x4xf32, #tpu.memory_space<vmem>>, vector<16x4xf32>
    %18 = vector.broadcast %16 : vector<1x4xf32> to vector<16x4xf32>
    %19 = arith.mulf %18, %17 : vector<16x4xf32>
    %cst_13 = arith.constant dense<0.000000e+00> : vector<16xf32>
    %20 = vector.multi_reduction <add>, %19, %cst_13 [1] : vector<16x4xf32> to vector<16xf32>
    %21 = vector.shape_cast %20 : vector<16xf32> to vector<16x1xf32>
    %c0_14 = arith.constant 0 : index
    %c0_15 = arith.constant 0 : index
    %22 = vector.load %arg6[%c0_14, %c0_15] : memref<16x1xf32, #tpu.memory_space<vmem>>, vector<16x1xf32>
    %23 = arith.mulf %21, %22 : vector<16x1xf32>
    %c0_16 = arith.constant 0 : index
    %c0_17 = arith.constant 0 : index
    %24 = vector.load %arg7[%c0_16, %c0_17] : memref<16x1xf32, #tpu.memory_space<vmem>>, vector<16x1xf32>
    %25 = arith.addf %23, %24 : vector<16x1xf32>
    %cst_18 = arith.constant 3.000000e+00 : f32
    %26 = vector.broadcast %cst_18 : f32 to vector<16x1xf32>
    %27 = arith.addf %25, %26 : vector<16x1xf32>
    %cst_19 = arith.constant 0.000000e+00 : f32
    %28 = vector.broadcast %cst_19 : f32 to vector<16x1xf32>
    %29 = arith.maximumf %27, %28 : vector<16x1xf32>
    %cst_20 = arith.constant 6.000000e+00 : f32
    %30 = vector.broadcast %cst_20 : f32 to vector<16x1xf32>
    %31 = arith.minimumf %29, %30 : vector<16x1xf32>
    %cst_21 = arith.constant 0.166666672 : f32
    %32 = vector.broadcast %cst_21 : f32 to vector<16x1xf32>
    %33 = arith.mulf %31, %32 : vector<16x1xf32>
    %34 = vector.broadcast %33 : vector<16x1xf32> to vector<16x256xf32>
    %35 = arith.mulf %1, %34 : vector<16x256xf32>
    %c0_22 = arith.constant 0 : index
    %c0_23 = arith.constant 0 : index
    %c0_24 = arith.constant 0 : index
    %36 = vector.load %arg8[%c0_22, %c0_23, %c0_24] : memref<1x16x256xf32, #tpu.memory_space<vmem>>, vector<1x16x256xf32>
    %37 = vector.shape_cast %36 : vector<1x16x256xf32> to vector<16x256xf32>
    %38 = vector.shape_cast %35 : vector<16x256xf32> to vector<1x16x256xf32>
    tpu.vector_store %arg8[%c0_22, %c0_23, %c0_24], %38 {strides = array<i32>} : memref<1x16x256xf32, #tpu.memory_space<vmem>>, vector<1x16x256xf32>,
    return
  }
  func.func @transform_0(%arg0: i32) -> (i32, i32, i32) {
    %c0_i32 = arith.constant 0 : i32
    %c0_i32_0 = arith.constant 0 : i32
    %c0_i32_1 = arith.constant 0 : i32
    return %arg0, %c0_i32, %c0_i32_0 : i32, i32, i32
  }
  func.func @transform_1(%arg0: i32) -> (i32, i32) {
    %c0_i32 = arith.constant 0 : i32
    %c0_i32_0 = arith.constant 0 : i32
    %c0_i32_1 = arith.constant 0 : i32
    return %c0_i32, %c0_i32_0 : i32, i32
  }
  func.func @transform_2(%arg0: i32) -> (i32, i32) {
    %c0_i32 = arith.constant 0 : i32
    %c0_i32_0 = arith.constant 0 : i32
    %c0_i32_1 = arith.constant 0 : i32
    return %c0_i32, %c0_i32_0 : i32, i32
  }
  func.func @transform_3(%arg0: i32) -> (i32, i32) {
    %c0_i32 = arith.constant 0 : i32
    %c0_i32_0 = arith.constant 0 : i32
    %c0_i32_1 = arith.constant 0 : i32
    return %c0_i32, %c0_i32_0 : i32, i32
  }
  func.func @transform_4(%arg0: i32) -> (i32, i32) {
    %c0_i32 = arith.constant 0 : i32
    %c0_i32_0 = arith.constant 0 : i32
    %c0_i32_1 = arith.constant 0 : i32
    return %c0_i32, %c0_i32_0 : i32, i32
  }
  func.func @transform_5(%arg0: i32) -> (i32, i32) {
    %c0_i32 = arith.constant 0 : i32
    %c0_i32_0 = arith.constant 0 : i32
    %c0_i32_1 = arith.constant 0 : i32
    return %c0_i32, %c0_i32_0 : i32, i32
  }
  func.func @transform_6(%arg0: i32) -> (i32, i32) {
    %c0_i32 = arith.constant 0 : i32
    %c0_i32_0 = arith.constant 0 : i32
    %c0_i32_1 = arith.constant 0 : i32
    return %c0_i32, %c0_i32_0 : i32, i32
  }
  func.func @transform_7(%arg0: i32) -> (i32, i32, i32) {
    %c0_i32 = arith.constant 0 : i32
    %c0_i32_0 = arith.constant 0 : i32
    %c0_i32_1 = arith.constant 0 : i32
    return %arg0, %c0_i32, %c0_i32_0 : i32, i32, i32
  }
}

</mosaic_0001>

<bundles_post_ra>
// kernel: _se_forward_impl.1
= control target key start
LH: loop header
LB: loop body
LE: loop exit
PB: predicated region body
PF: predicated region fallthrough
CT: control target
= control target key end

     0   :  { %s486_s24 = smov 0   ;;  %s560_s0 = inlined_call_operand.vmem [shape: f32[2,16,256], index: 0, kind: input, shape index: {}]   ;;  %s561_s1 = inlined_call_operand.vmem [shape: f32[16,4], index: 1, kind: input, shape index: {}]   ;;  %s562_s2 = inlined_call_operand.vmem [shape: f32[1,4], index: 2, kind: input, shape index: {}]   ;;  %s563_s3 = inlined_call_operand.vmem [shape: f32[1,4], index: 3, kind: input, shape index: {}]   ;;  %s564_s4 = inlined_call_operand.vmem [shape: f32[16,4], index: 4, kind: input, shape index: {}]   ;;  %s565_s5 = inlined_call_operand.vmem [shape: f32[16,1], index: 5, kind: input, shape index: {}]   ;;  %s566_s6 = inlined_call_operand.vmem [shape: f32[16,1], index: 6, kind: input, shape index: {}]   ;;  %s567_s7 = inlined_call_operand.vmem [shape: f32[2,16,256], index: 7, kind: output, shape index: {}]  }
   0x1 LB: > { %s413_s25 = sadd.s32 4294967295, %s443_s24   ;;  %p417_p0 = scmp.ge.s32.totalorder %s443_s24, 1  ;;  %s443_s24 = sphi %s486_s24, %s17_s24  }
   0x2   : > { %p237_p1 = scmp.lt.s32.totalorder %s443_s24, 3 }
   0x4   : > { %p238_p2 = pnand %p417_p0, %p237_p1 }
   0x5   : > { %p269_p3 = scmp.lt.s32.totalorder (!%p238_p2), %s413_s25, 1 }
   0x6   : > { %241 = sbr.rel (%p238_p2) target bundleno = 470 (0x1d6), region = 48 }
   0xb   : > { %s569_s25 = smov (!%p269_p3, %s413_s25), 1  ;;  %v291_v8 = vld [vmem:[%s561_s1] sm:$0xff]  ;;  %v292_v9 = vld [vmem:[%s561_s1 + $0x8] sm:$0xff]  ;;  %vm295_vm0 = vcmask 31744   ;;  %v312_v21 = vlaneseq  ;;  %v445_v38 = vmov 0  }
   0xc   : > { %s424_s26 = sshll.u32 %s569_s25, 5  ;;  %v305_v23 = vld [vmem:[%s562_s2] sm:$0x1]  ;;  %v311_v33 = vld [vmem:[%s564_s4 + $0x8] sm:$0xff]  ;;  %435 = vset.pattern.permute.xlu0 %v445_v38  ;;  %436 = vset.pattern.permute.xlu1 %v445_v38 }
   0xd   : > { %s273_s29 = scalar_lea.vmem %s560_s0, %s424_s26  ;;  %v313_v25 = vshrl.u32 %v312_v21, 7  ;;  %v307_v26 = vld [vmem:[%s563_s3] sm:$0x1]  ;;  %v325_v43 = vld [vmem:[%s565_s5 + $0x8] sm:$0xff]  ;;  %s278_s9 = scalar_lea.vmem %s567_s7, %s424_s26 }
   0xe   : > { %v502_v0 = vld [vmem:[%s273_s29] sm:$0xff]  ;;  %v504_v1 = vld [vmem:[%s273_s29 + $0x8] sm:$0xff]  ;;  %v506_v2 = vld [vmem:[%s273_s29 + $0x10] sm:$0xff] }
   0xf   : > { %v283_v3 = vadd.f32 %v504_v1, %v502_v0  ;;  %v510_v4 = vld [vmem:[%s273_s29 + $0x18] sm:$0xff]  ;;  %v314_v29 = vsub.s32 0, %v313_v25  ;;  %v310_v31 = vld [vmem:[%s564_s4] sm:$0xff]  ;;  %v329_v45 = vld [vmem:[%s566_s6 + $0x8] sm:$0xff] }
  0x10   : > { %v286_v5 = vadd.f32 %v510_v4, %v506_v2  ;;  %v324_v39 = vld [vmem:[%s565_s5] sm:$0xff] }
  0x11   : > { %284 = vadd.xlane.f32.xlu0 %v283_v3  ;;  %v328_v40 = vld [vmem:[%s566_s6] sm:$0xff] }
  0x15   : > { %287 = vadd.xlane.f32.xlu0 %v286_v5 }
  0x9a   : > { %v285_v6 = vpop.xlane.xlu0 %284 }
  0x9b   : > { %v289_v7 = vmul.f32 0.00390625, %v285_v6 }
  0x9d   : > { %v293_v11 = vmul.f32 %v291_v8, %v289_v7 }
  0x9e   : > { %v288_v10 = vpop.xlane.xlu0 %287 }
  0x9f   : > { %v290_v12 = vmul.f32 0.00390625, %v288_v10  ;;  %v296_v14 = vsel %vm295_vm0, %v293_v11, 0.0 }
  0xa1   : > { %v294_v13 = vmul.f32 %v292_v9, %v290_v12 }
  0xa3   : > { %v297_v15 = vsel %vm295_vm0, %v294_v13, 0.0 }
  0xa4   : > { %v298_v16 = vadd.f32 %v297_v15, %v296_v14 }
  0xa6   : > { %v299_v17 = vrot.slane %v298_v16, 4 }
  0xa8   : > { %v300_v18 = vadd.f32 %v299_v17, %v298_v16 }
  0xaa   : > { %v301_v19 = vrot.slane %v300_v18, 2 }
  0xac   : > { %v302_v20 = vadd.f32 %v301_v19, %v300_v18 }
  0xae   : > { %v303_v22 = vrot.slane %v302_v20, 1 }
  0xb0   : > { %v304_v24 = vadd.f32 %v303_v22, %v302_v20 }
  0xb2   : > { %v306_v27 = vmul.f32 %v305_v23, %v304_v24 }
  0xb4   : > { %v308_v28 = vadd.f32 %v307_v26, %v306_v27 }
  0xb6   : > { %v309_v30 = vmax.f32 %v308_v28, 0.0 }
  0xb8   : > { %v315_v32 = vrot.slane %v309_v30, %v314_v29 }
  0xba   : > { %v316_v34 = vmul.f32 %v315_v32, %v310_v31  ;;  %v317_v36 = vmul.f32 %v315_v32, %v311_v33 }
  0xbc   : > { %v318_v35 = vsel %vm295_vm0, %v316_v34, 0.0  ;;  %v321_v37 = vsel %vm295_vm0, %v317_v36, 0.0 }
  0xbd   : > { %319 = vadd.xlane.f32.xlu1 %v318_v35 }
  0xc1   : > { %322 = vadd.xlane.f32.xlu1 %v321_v37 }
 0x146   : > { %v320_v41 = vpop.xlane.xlu1 %319 }
 0x147   : > { %v326_v42 = vmul.f32 %v324_v39, %v320_v41 }
 0x149   : > { %v330_v44 = vadd.f32 %v328_v40, %v326_v42 }
 0x14a   : > { %v323_v46 = vpop.xlane.xlu1 %322 }
 0x14b   : > { %v332_v47 = vadd.f32 3.0, %v330_v44  ;;  %v327_v48 = vmul.f32 %v325_v43, %v323_v46 }
 0x14d   : > { %v334_v49 = vmax.f32 %v332_v47, 0.0  ;;  %v331_v50 = vadd.f32 %v329_v45, %v327_v48 }
 0x14f   : > { %v336_v51 = vmin.f32 %v334_v49, 6.0  ;;  %v333_v52 = vadd.f32 3.0, %v331_v50 }
 0x151   : > { %v335_v53 = vmax.f32 %v333_v52, 0.0  ;;  %v338_v54 = vmul.f32 0.16666667, %v336_v51 }
 0x153   : > { %v337_v55 = vmin.f32 %v335_v53, 6.0  ;;  %342 = vperm.xlu0 %435, %v338_v54  }
 0x155   : > { %v339_v56 = vmul.f32 0.16666667, %v337_v55 }
 0x157   : > { %347 = vperm.xlu1 %436, %v339_v56  }
 0x1ce   : > { %v343_v57 = vpop.permute.xlu0 %342 }
 0x1cf   : > { %v350_v58 = vmul.f32 %v343_v57, %v502_v0  ;;  %v351_v59 = vmul.f32 %v343_v57, %v504_v1 }
 0x1d1   : > { %354 = vst [vmem:[%s278_s9] sm:$0xff] %v350_v58  ;;  %355 = vst [vmem:[%s278_s9 + $0x8] sm:$0xff] %v351_v59 }
 0x1d2   : > { %v348_v60 = vpop.permute.xlu1 %347 }
 0x1d3   : > { %v352_v61 = vmul.f32 %v348_v60, %v506_v2  ;;  %v353_v62 = vmul.f32 %v348_v60, %v510_v4 }
 0x1d5   : > { %356 = vst [vmem:[%s278_s9 + $0x10] sm:$0xff] %v352_v61  ;;  %357 = vst [vmem:[%s278_s9 + $0x18] sm:$0xff] %v353_v62 }
 0x1d6 PF: > { %s17_s24 = sadd.s32 1, %s443_s24  }
 0x1d7   : > { %p14_p4 = scmp.ge.s32.totalorder %s17_s24, 4  }
 0x1d9   :  { %16 = sbr.rel (!%p14_p4) target bundleno = 1 (0x1), region = 78 }

</bundles_post_ra>
